<compile_context>
chip_gen: v5e
topology: v5e:2x2
jax: 0.10.0
libtpu: 0.0.40
codegen_flags: <defaults>
</compile_context>

<pallas_src>
import functools

import jax
import jax.numpy as jnp
from jax import lax
from jax.experimental import pallas as pl
from jax.experimental.pallas import tpu as pltpu


# ----------------------------- fused Pallas kernel ---------------------------


def _fused_attention_kernel(xq_ref, xk_ref, wqkv_ref, wout_ref, bout_ref,
                            o_ref, m_sc, l_sc, acc_sc, q_sc, *rest,
                            heads, dim_head, scale, cache_kv):
    """One (batch, q-tile, kv-tile) grid step.

    xq_ref:   (1, C, TQ)    x block for the query tokens (channels-first)
    xk_ref:   (1, C, TK)    x block for the key/value tokens
    wqkv_ref: (3*inner, C)  qkv 1x1-conv weight (no bias)
    wout_ref: (C, inner)    output 1x1-conv weight
    bout_ref: (C, 1)        output 1x1-conv bias
    o_ref:    (1, C, TQ)    output block (channels-first)
    m_sc:     (heads, 1, TQ)  running row max (f32, lanes = query tokens)
    l_sc:     (heads, 1, TQ)  running softmax denominator (f32)
    acc_sc:   (inner, TQ)     running attention output (head-major rows)
    q_sc:     (inner, TQ)     hoisted q projection (scale folded in)
    rest[0]:  (2*inner, n)    k/v projection cache (only when cache_kv)
    """
    qi = pl.program_id(1)
    ki = pl.program_id(2)
    nk = pl.num_programs(2)
    inner = heads * dim_head
    tq = q_sc.shape[-1]
    tk = xk_ref.shape[-1]

    w = wqkv_ref[...]                         # (3*inner, C)

    # ---- once per q tile: init running stats + hoist q projection ----------
    @pl.when(ki == 0)
    def _init():
        m_sc[...] = jnp.full_like(m_sc, -jnp.inf)
        l_sc[...] = jnp.zeros_like(l_sc)
        acc_sc[...] = jnp.zeros_like(acc_sc)
        # q 1x1 conv + softmax scale (O(n*d)), reused for every kv step.
        q_sc[...] = jnp.dot(w[:inner], xq_ref[0],
                            preferred_element_type=jnp.float32) * scale

    # ---- k/v projection: one fused (2*inner, TK) matmul ---------------------
    if cache_kv:
        kv_sc = rest[0]
        col = pl.multiple_of(ki * tk, tk)

        @pl.when(qi == 0)
        def _proj_kv():
            # Fill the persistent cache once per batch (qi == 0 sweeps all ki).
            kv_sc[:, pl.ds(col, tk)] = jnp.dot(
                w[inner:], xk_ref[0], preferred_element_type=jnp.float32)

        # TODO(synk): for qi > 0 the xk block DMA is redundant (cache hit);
        # a block-index trick in the index_map could skip the re-fetch.
        kvT = kv_sc[:, pl.ds(col, tk)]        # (2*inner, TK)
    else:
        kvT = jnp.dot(w[inner:], xk_ref[0], preferred_element_type=jnp.float32)

    kT = kvT[:inner]                          # (inner, TK)
    vT = kvT[inner:]                          # (inner, TK)
    qT = q_sc[...]                            # (inner, TQ)

    # ---- per-head flash step; token axis stays on lanes ---------------------
    # TODO(synk): for heads > 2 or very wide tiles, switch this static unroll
    # to a lax.fori_loop over heads (pl.ds(h*dim_head, dim_head)) to bound
    # vreg pressure.
    for h in range(heads):
        lo, hi = h * dim_head, (h + 1) * dim_head
        qT_h = qT[lo:hi]                      # (d, TQ)
        kT_h = kT[lo:hi]                      # (d, TK)
        vT_h = vT[lo:hi]                      # (d, TK)

        # s[j, i] = sum_d k[d, j] * q[d, i]   -> (TK, TQ), lanes = q tokens
        s = lax.dot_general(kT_h, qT_h, (((0,), (0,)), ((), ())),
                            preferred_element_type=jnp.float32)

        m_prev = m_sc[h]                                          # (1, TQ)
        m_new = jnp.maximum(m_prev, jnp.max(s, axis=0, keepdims=True))
        alpha = jnp.exp(m_prev - m_new)                           # (1, TQ)
        # f32 exp keeps v5e happy; on v6e/v7x a bf16 exp is a further EUP win.
        p = jnp.exp(s - m_new)                                    # (TK, TQ)

        l_sc[h] = alpha * l_sc[h] + jnp.sum(p, axis=0, keepdims=True)
        # p @ v as v(d,TK) @ p(TK,TQ): natural contraction, bf16 MXU inputs,
        # f32 accumulation.
        pv = jnp.dot(vT_h.astype(jnp.bfloat16), p.astype(jnp.bfloat16),
                     preferred_element_type=jnp.float32)          # (d, TQ)
        acc_sc[lo:hi] = alpha * acc_sc[lo:hi] + pv
        m_sc[h] = m_new

    # ---- finalize: normalize, out-proj, lane-dense store ---------------------
    @pl.when(ki == nk - 1)
    def _finalize():
        inv = pl.reciprocal(l_sc[...], approx=False)              # (heads, 1, TQ)
        acc = acc_sc[...].reshape(heads, dim_head, tq) * inv      # (heads, d, TQ)
        y = jnp.dot(wout_ref[...], acc.reshape(inner, tq),
                    preferred_element_type=jnp.float32)           # (C, TQ)
        o_ref[0] = (y + bout_ref[...]).astype(o_ref.dtype)


# ----------------------------- wrapper ---------------------------------------


def _pick_tile(n, target):
    """Largest multiple of 128 that divides n and is <= target (fallback: n)."""
    if n % 128 == 0:
        t = min(max(target, 128), n)
        t = (t // 128) * 128
        while n % t != 0:
            t -= 128
        return t
    # TODO(synk): ragged (non-128-divisible) H*W tiling; fall back to one full tile.
    return n


def efficient_attention(x, w_qkv, w_out, b_out, heads, dim_head,
                        *, tile_q=256, tile_kv=512):
    """Forward pass of EfficientAttention.

    x:      (B, C, H, W)  float32  (NCHW, like PyTorch)
    w_qkv:  (3*inner, C, 1, 1)     conv weight, no bias
    w_out:  (C, inner, 1, 1)       conv weight
    b_out:  (C,)                   conv bias
    """
    B, C, H, W = x.shape
    n = H * W
    inner = heads * dim_head
    scale = float(dim_head) ** (-0.5)

    # Generation-aware budgets (v5e/v6e: 128 MiB physical VMEM; v7x: 64 MiB).
    kind = ""
    try:
        kind = jax.devices()[0].device_kind.lower()
    except Exception:
        pass
    big_vmem = ("v5" in kind) or ("v6" in kind)
    vmem_limit = (64 if big_vmem else 32) * 1024 * 1024
    kv_cache_budget = (32 if big_vmem else 8) * 1024 * 1024
    score_budget = (8 if big_vmem else 4) * 1024 * 1024

    # Free reshapes only -- no XLA transpose passes.
    x_cn = x.reshape(B, C, n)                       # channels-first tokens
    w_qkv_oc = w_qkv.reshape(3 * inner, C)
    w_out_co = w_out.reshape(C, inner)
    b_col = b_out.reshape(C, 1)

    tq = _pick_tile(n, tile_q)
    tk = _pick_tile(n, tile_kv)
    # Cap the per-head (TK, TQ) f32 score/p temporaries (the limiting VMEM
    # allocation, especially on v7x): shrink tk first, then tq.
    if n % 128 == 0:
        if tq * tk * 4 > score_budget:
            tk = _pick_tile(n, max(128, (score_budget // (tq * 4)) // 128 * 128))
        if tq * tk * 4 > score_budget:
            tq = _pick_tile(n, max(128, (score_budget // (tk * 4)) // 128 * 128))

    grid = (B, n // tq, n // tk)

    # Cache projected k/v across q tiles when the whole-range cache fits VMEM.
    cache_kv = (2 * inner * n * 4) <= kv_cache_budget

    if cache_kv:
        # kv cache is filled at qi == 0 and reused for qi > 0, so the qi axis
        # must run sequentially on a core; batch stays parallel (megacore).
        dims = ("parallel", "arbitrary", "arbitrary")
    else:
        dims = ("parallel", "parallel", "arbitrary")

    scratch = [
        pltpu.VMEM((heads, 1, tq), jnp.float32),   # running max (lanes = tokens)
        pltpu.VMEM((heads, 1, tq), jnp.float32),   # running softmax denominator
        pltpu.VMEM((inner, tq), jnp.float32),      # attention output accumulator
        pltpu.VMEM((inner, tq), jnp.float32),      # hoisted q projection
    ]
    if cache_kv:
        scratch.append(pltpu.VMEM((2 * inner, n), jnp.float32))  # k/v cache

    kern = functools.partial(_fused_attention_kernel,
                             heads=heads, dim_head=dim_head, scale=scale,
                             cache_kv=cache_kv)

    out = pl.pallas_call(
        kern,
        out_shape=jax.ShapeDtypeStruct((B, C, n), x.dtype),
        grid_spec=pltpu.PrefetchScalarGridSpec(
            num_scalar_prefetch=0,
            grid=grid,
            in_specs=[
                pl.BlockSpec((1, C, tq), lambda b, qi, ki: (b, 0, qi)),   # x (q tile)
                # TODO(synk): add pipeline_mode=pl.Buffered(3) on the kv tile
                # if profiling shows exposed DMA at kv-step boundaries.
                pl.BlockSpec((1, C, tk), lambda b, qi, ki: (b, 0, ki)),   # x (kv tile)
                pl.BlockSpec((3 * inner, C), lambda b, qi, ki: (0, 0)),   # qkv weight
                pl.BlockSpec((C, inner), lambda b, qi, ki: (0, 0)),       # out weight
                pl.BlockSpec((C, 1), lambda b, qi, ki: (0, 0)),           # out bias
            ],
            out_specs=pl.BlockSpec((1, C, tq), lambda b, qi, ki: (b, 0, qi)),
            scratch_shapes=scratch,
        ),
        compiler_params=pltpu.CompilerParams(
            dimension_semantics=dims,
            vmem_limit_bytes=vmem_limit,
        ),
    )(x_cn, x_cn, w_qkv_oc, w_out_co, b_col)

    return out.reshape(B, C, H, W)


# ----------------------------- reference (pure JAX) ---------------------------


def efficient_attention_ref(x, w_qkv, w_out, b_out, heads, dim_head):
    B, C, H, W = x.shape
    n = H * W
    inner = heads * dim_head
    scale = float(dim_head) ** (-0.5)

    wq = w_qkv.reshape(3 * inner, C)
    qkv = jnp.einsum("oc,bchw->bohw", wq, x)                       # (B, 3*inner, H, W)
    q, k, v = jnp.split(qkv, 3, axis=1)
    q = q.reshape(B, heads, dim_head, n)
    k = k.reshape(B, heads, dim_head, n)
    v = v.reshape(B, heads, dim_head, n)
    dots = jnp.einsum("bhdi,bhdj->bhij", q, k) * scale             # (B, heads, n, n)
    attn = jax.nn.softmax(dots, axis=-1)
    out = jnp.einsum("bhdj,bhij->bhdi", v, attn)                   # (B, heads, d, n)
    out = out.reshape(B, inner, H, W)
    wo = w_out.reshape(C, inner)
    y = jnp.einsum("oc,bchw->bohw", wo, out) + b_out.reshape(1, C, 1, 1)
    return y


# ----------------------------- main -------------------------------------------


if __name__ == "__main__":
    B, C, H, W = 2, 4, 16, 16          # n = H*W = 256 tokens
    heads, dim_head = 2, 8
    inner = heads * dim_head

    key = jax.random.PRNGKey(0)
    kx, kq, kw, kb = jax.random.split(key, 4)

    x = jax.random.normal(kx, (B, C, H, W), dtype=jnp.float32)
    w_qkv = jax.random.normal(kq, (3 * inner, C, 1, 1), dtype=jnp.float32) * 0.1
    w_out = jax.random.normal(kw, (C, inner, 1, 1), dtype=jnp.float32) * 0.1
    b_out = jax.random.normal(kb, (C,), dtype=jnp.float32) * 0.1

    # 128/128 tiles -> grid (2, 2, 2): exercises the multi-step flash
    # accumulation, the hoisted q projection, and the kv cache reuse at qi > 0.
    y = efficient_attention(x, w_qkv, w_out, b_out, heads, dim_head,
                            tile_q=128, tile_kv=128)
    y = jax.block_until_ready(y)

    y_ref = efficient_attention_ref(x, w_qkv, w_out, b_out, heads, dim_head)
    assert y.shape == (B, C, H, W)
    # tolerance covers the bf16 inputs of the p@v MXU matmul (f32 accumulation)
    assert jnp.allclose(y, y_ref, atol=3e-3, rtol=3e-3), "mismatch vs reference"

    print("KERNEL_OK")
</pallas_src>

<mosaic_0001>
module attributes {stable_mosaic.version = 11 : i64} {
  func.func @_fused_attention_kernel(%arg0: i32, %arg1: i32, %arg2: i32, %arg3: memref<1x4x128xf32, #tpu.memory_space<vmem>>, %arg4: memref<1x4x128xf32, #tpu.memory_space<vmem>>, %arg5: memref<48x4xf32, #tpu.memory_space<vmem>>, %arg6: memref<4x16xf32, #tpu.memory_space<vmem>>, %arg7: memref<4x1xf32, #tpu.memory_space<vmem>>, %arg8: memref<1x4x128xf32, #tpu.memory_space<vmem>>, %arg9: memref<2x1x128xf32, #tpu.memory_space<vmem>>, %arg10: memref<2x1x128xf32, #tpu.memory_space<vmem>>, %arg11: memref<16x128xf32, #tpu.memory_space<vmem>>, %arg12: memref<16x128xf32, #tpu.memory_space<vmem>>, %arg13: memref<32x256xf32, #tpu.memory_space<vmem>>) attributes {dimension_semantics = [#tpu.dimension_semantics<parallel>, #tpu.dimension_semantics<arbitrary>, #tpu.dimension_semantics<arbitrary>], iteration_bounds = array<i64: 2, 2, 2>, scalar_prefetch = 0 : i64, scratch_operands = 5 : i64, tpu.core_type = #tpu.core_type<tc>, window_params = [{transform_indices = @transform_0, window_bounds = array<i64: 1, 4, 128>}, {transform_indices = @transform_1, window_bounds = array<i64: 1, 4, 128>}, {pipeline_mode = #tpu.pipeline_mode<synchronous>, transform_indices = @transform_2, window_bounds = array<i64: 48, 4>}, {pipeline_mode = #tpu.pipeline_mode<synchronous>, transform_indices = @transform_3, window_bounds = array<i64: 4, 16>}, {pipeline_mode = #tpu.pipeline_mode<synchronous>, transform_indices = @transform_4, window_bounds = array<i64: 4, 1>}, {transform_indices = @transform_5, window_bounds = array<i64: 1, 4, 128>}]} {
    %c0 = arith.constant 0 : index
    %c0_0 = arith.constant 0 : index
    %0 = vector.load %arg5[%c0, %c0_0] : memref<48x4xf32, #tpu.memory_space<vmem>>, vector<48x4xf32>
    %c0_i32 = arith.constant 0 : i32
    %1 = arith.cmpi eq, %arg2, %c0_i32 : i32
    %2 = arith.extui %1 : i1 to i32
    %c0_i32_1 = arith.constant 0 : i32
    %3 = arith.cmpi ne, %2, %c0_i32_1 : i32
    scf.if %3 {
      %cst_45 = arith.constant 0xFF800000 : f32
      %85 = vector.broadcast %cst_45 : f32 to vector<2x1x128xf32>
      %c0_46 = arith.constant 0 : index
      %c0_47 = arith.constant 0 : index
      %c0_48 = arith.constant 0 : index
      %86 = vector.load %arg9[%c0_46, %c0_47, %c0_48] : memref<2x1x128xf32, #tpu.memory_space<vmem>>, vector<2x1x128xf32>
      tpu.vector_store %arg9[%c0_46, %c0_47, %c0_48], %85 {strides = array<i32>} : memref<2x1x128xf32, #tpu.memory_space<vmem>>, vector<2x1x128xf32>,
      %cst_49 = arith.constant 0.000000e+00 : f32
      %87 = vector.broadcast %cst_49 : f32 to vector<2x1x128xf32>
      %c0_50 = arith.constant 0 : index
      %c0_51 = arith.constant 0 : index
      %c0_52 = arith.constant 0 : index
      %88 = vector.load %arg10[%c0_50, %c0_51, %c0_52] : memref<2x1x128xf32, #tpu.memory_space<vmem>>, vector<2x1x128xf32>
      tpu.vector_store %arg10[%c0_50, %c0_51, %c0_52], %87 {strides = array<i32>} : memref<2x1x128xf32, #tpu.memory_space<vmem>>, vector<2x1x128xf32>,
      %cst_53 = arith.constant 0.000000e+00 : f32
      %89 = vector.broadcast %cst_53 : f32 to vector<16x128xf32>
      %c0_54 = arith.constant 0 : index
      %c0_55 = arith.constant 0 : index
      %90 = vector.load %arg11[%c0_54, %c0_55] : memref<16x128xf32, #tpu.memory_space<vmem>>, vector<16x128xf32>
      tpu.vector_store %arg11[%c0_54, %c0_55], %89 {strides = array<i32>} : memref<16x128xf32, #tpu.memory_space<vmem>>, vector<16x128xf32>,
      %91 = vector.extract_strided_slice %0 {offsets = [0, 0], sizes = [16, 4], strides = [1, 1]} : vector<48x4xf32> to vector<16x4xf32>
      %c0_56 = arith.constant 0 : index
      %c0_57 = arith.constant 0 : index
      %c0_58 = arith.constant 0 : index
      %92 = vector.load %arg3[%c0_56, %c0_57, %c0_58] : memref<1x4x128xf32, #tpu.memory_space<vmem>>, vector<1x4x128xf32>
      %93 = vector.shape_cast %92 : vector<1x4x128xf32> to vector<4x128xf32>
      %cst_59 = arith.constant dense<0.000000e+00> : vector<16x128xf32>
      %94 = tpu.matmul %91, %93, %cst_59 {dimension_numbers = #tpu.dot_dimension_numbers<[1], [0], [0], [1], [0, 0, 1, 1], [], []>} : vector<16x4xf32>, vector<4x128xf32>, vector<16x128xf32> -> vector<16x128xf32>
      %cst_60 = arith.constant 0.353553385 : f32
      %95 = vector.broadcast %cst_60 : f32 to vector<16x128xf32>
      %96 = arith.mulf %94, %95 : vector<16x128xf32>
      %c0_61 = arith.constant 0 : index
      %c0_62 = arith.constant 0 : index
      %97 = vector.load %arg12[%c0_61, %c0_62] : memref<16x128xf32, #tpu.memory_space<vmem>>, vector<16x128xf32>
      tpu.vector_store %arg12[%c0_61, %c0_62], %96 {strides = array<i32>} : memref<16x128xf32, #tpu.memory_space<vmem>>, vector<16x128xf32>,
    } else {
    }
    %c128_i32 = arith.constant 128 : i32
    %4 = arith.muli %arg2, %c128_i32 : i32
    %5 = tpu.assume_multiple %4, 128 : i32
    %c0_i32_2 = arith.constant 0 : i32
    %6 = arith.cmpi eq, %arg1, %c0_i32_2 : i32
    %7 = arith.extui %6 : i1 to i32
    %c0_i32_3 = arith.constant 0 : i32
    %8 = arith.cmpi ne, %7, %c0_i32_3 : i32
    scf.if %8 {
      %85 = vector.extract_strided_slice %0 {offsets = [16, 0], sizes = [32, 4], strides = [1, 1]} : vector<48x4xf32> to vector<32x4xf32>
      %c0_45 = arith.constant 0 : index
      %c0_46 = arith.constant 0 : index
      %c0_47 = arith.constant 0 : index
      %86 = vector.load %arg4[%c0_45, %c0_46, %c0_47] : memref<1x4x128xf32, #tpu.memory_space<vmem>>, vector<1x4x128xf32>
      %87 = vector.shape_cast %86 : vector<1x4x128xf32> to vector<4x128xf32>
      %cst_48 = arith.constant dense<0.000000e+00> : vector<32x128xf32>
      %88 = tpu.matmul %85, %87, %cst_48 {dimension_numbers = #tpu.dot_dimension_numbers<[1], [0], [0], [1], [0, 0, 1, 1], [], []>} : vector<32x4xf32>, vector<4x128xf32>, vector<32x128xf32> -> vector<32x128xf32>
      %c0_49 = arith.constant 0 : index
      %89 = arith.index_cast %5 : i32 to index
      %90 = vector.load %arg13[%c0_49, %89] : memref<32x256xf32, #tpu.memory_space<vmem>>, vector<32x128xf32>
      tpu.vector_store %arg13[%c0_49, %89], %88 {strides = array<i32>} : memref<32x256xf32, #tpu.memory_space<vmem>>, vector<32x128xf32>,
    } else {
    }
    %c0_4 = arith.constant 0 : index
    %9 = arith.index_cast %5 : i32 to index
    %10 = vector.load %arg13[%c0_4, %9] : memref<32x256xf32, #tpu.memory_space<vmem>>, vector<32x128xf32>
    %11 = vector.extract_strided_slice %10 {offsets = [0, 0], sizes = [16, 128], strides = [1, 1]} : vector<32x128xf32> to vector<16x128xf32>
    %12 = vector.extract_strided_slice %10 {offsets = [16, 0], sizes = [16, 128], strides = [1, 1]} : vector<32x128xf32> to vector<16x128xf32>
    %c0_5 = arith.constant 0 : index
    %c0_6 = arith.constant 0 : index
    %13 = vector.load %arg12[%c0_5, %c0_6] : memref<16x128xf32, #tpu.memory_space<vmem>>, vector<16x128xf32>
    %14 = vector.extract_strided_slice %13 {offsets = [0, 0], sizes = [8, 128], strides = [1, 1]} : vector<16x128xf32> to vector<8x128xf32>
    %15 = vector.extract_strided_slice %11 {offsets = [0, 0], sizes = [8, 128], strides = [1, 1]} : vector<16x128xf32> to vector<8x128xf32>
    %16 = vector.extract_strided_slice %12 {offsets = [0, 0], sizes = [8, 128], strides = [1, 1]} : vector<16x128xf32> to vector<8x128xf32>
    %cst = arith.constant dense<0.000000e+00> : vector<128x128xf32>
    %17 = tpu.matmul %15, %14, %cst {dimension_numbers = #tpu.dot_dimension_numbers<[0], [0], [1], [1], [0, 1, 1, 1], [], []>} : vector<8x128xf32>, vector<8x128xf32>, vector<128x128xf32> -> vector<128x128xf32>
    %c0_7 = arith.constant 0 : index
    %c0_8 = arith.constant 0 : index
    %c0_9 = arith.constant 0 : index
    %18 = vector.load %arg9[%c0_7, %c0_8, %c0_9] : memref<2x1x128xf32, #tpu.memory_space<vmem>>, vector<1x1x128xf32>
    %19 = vector.shape_cast %18 : vector<1x1x128xf32> to vector<1x128xf32>
    %cst_10 = arith.constant dense<0xFF800000> : vector<128xf32>
    %20 = vector.multi_reduction <maximumf>, %17, %cst_10 [0] : vector<128x128xf32> to vector<128xf32>
    %21 = vector.shape_cast %20 : vector<128xf32> to vector<1x128xf32>
    %22 = arith.maximumf %19, %21 : vector<1x128xf32>
    %23 = arith.subf %19, %22 : vector<1x128xf32>
    %24 = math.exp %23 : vector<1x128xf32>
    %25 = vector.broadcast %22 : vector<1x128xf32> to vector<128x128xf32>
    %26 = arith.subf %17, %25 : vector<128x128xf32>
    %27 = math.exp %26 : vector<128x128xf32>
    %c0_11 = arith.constant 0 : index
    %c0_12 = arith.constant 0 : index
    %c0_13 = arith.constant 0 : index
    %28 = vector.load %arg10[%c0_11, %c0_12, %c0_13] : memref<2x1x128xf32, #tpu.memory_space<vmem>>, vector<1x1x128xf32>
    %29 = vector.shape_cast %28 : vector<1x1x128xf32> to vector<1x128xf32>
    %30 = arith.mulf %24, %29 : vector<1x128xf32>
    %cst_14 = arith.constant dense<0.000000e+00> : vector<128xf32>
    %31 = vector.multi_reduction <add>, %27, %cst_14 [0] : vector<128x128xf32> to vector<128xf32>
    %32 = vector.shape_cast %31 : vector<128xf32> to vector<1x128xf32>
    %33 = arith.addf %30, %32 : vector<1x128xf32>
    %c0_15 = arith.constant 0 : index
    %c0_16 = arith.constant 0 : index
    %c0_17 = arith.constant 0 : index
    %34 = vector.load %arg10[%c0_15, %c0_16, %c0_17] : memref<2x1x128xf32, #tpu.memory_space<vmem>>, vector<1x1x128xf32>
    %35 = vector.shape_cast %34 : vector<1x1x128xf32> to vector<1x128xf32>
    %36 = vector.shape_cast %33 : vector<1x128xf32> to vector<1x1x128xf32>
    tpu.vector_store %arg10[%c0_15, %c0_16, %c0_17], %36 {strides = array<i32>} : memref<2x1x128xf32, #tpu.memory_space<vmem>>, vector<1x1x128xf32>,
    %37 = arith.truncf %16 : vector<8x128xf32> to vector<8x128xbf16>
    %38 = arith.truncf %27 : vector<128x128xf32> to vector<128x128xbf16>
    %cst_18 = arith.constant dense<0.000000e+00> : vector<8x128xf32>
    %39 = tpu.matmul %37, %38, %cst_18 {dimension_numbers = #tpu.dot_dimension_numbers<[1], [0], [0], [1], [0, 0, 1, 1], [], []>} : vector<8x128xbf16>, vector<128x128xbf16>, vector<8x128xf32> -> vector<8x128xf32>
    %c0_19 = arith.constant 0 : index
    %c0_20 = arith.constant 0 : index
    %40 = vector.load %arg11[%c0_19, %c0_20] : memref<16x128xf32, #tpu.memory_space<vmem>>, vector<8x128xf32>
    %41 = vector.broadcast %24 : vector<1x128xf32> to vector<8x128xf32>
    %42 = arith.mulf %41, %40 : vector<8x128xf32>
    %43 = arith.addf %42, %39 : vector<8x128xf32>
    %c0_21 = arith.constant 0 : index
    %c0_22 = arith.constant 0 : index
    %44 = vector.load %arg11[%c0_21, %c0_22] : memref<16x128xf32, #tpu.memory_space<vmem>>, vector<8x128xf32>
    tpu.vector_store %arg11[%c0_21, %c0_22], %43 {strides = array<i32>} : memref<16x128xf32, #tpu.memory_space<vmem>>, vector<8x128xf32>,
    %c0_23 = arith.constant 0 : index
    %c0_24 = arith.constant 0 : index
    %c0_25 = arith.constant 0 : index
    %45 = vector.load %arg9[%c0_23, %c0_24, %c0_25] : memref<2x1x128xf32, #tpu.memory_space<vmem>>, vector<1x1x128xf32>
    %46 = vector.shape_cast %45 : vector<1x1x128xf32> to vector<1x128xf32>
    %47 = vector.shape_cast %22 : vector<1x128xf32> to vector<1x1x128xf32>
    tpu.vector_store %arg9[%c0_23, %c0_24, %c0_25], %47 {strides = array<i32>} : memref<2x1x128xf32, #tpu.memory_space<vmem>>, vector<1x1x128xf32>,
    %48 = vector.extract_strided_slice %13 {offsets = [8, 0], sizes = [8, 128], strides = [1, 1]} : vector<16x128xf32> to vector<8x128xf32>
    %49 = vector.extract_strided_slice %11 {offsets = [8, 0], sizes = [8, 128], strides = [1, 1]} : vector<16x128xf32> to vector<8x128xf32>
    %50 = vector.extract_strided_slice %12 {offsets = [8, 0], sizes = [8, 128], strides = [1, 1]} : vector<16x128xf32> to vector<8x128xf32>
    %cst_26 = arith.constant dense<0.000000e+00> : vector<128x128xf32>
    %51 = tpu.matmul %49, %48, %cst_26 {dimension_numbers = #tpu.dot_dimension_numbers<[0], [0], [1], [1], [0, 1, 1, 1], [], []>} : vector<8x128xf32>, vector<8x128xf32>, vector<128x128xf32> -> vector<128x128xf32>
    %c1 = arith.constant 1 : index
    %c0_27 = arith.constant 0 : index
    %c0_28 = arith.constant 0 : index
    %52 = vector.load %arg9[%c1, %c0_27, %c0_28] : memref<2x1x128xf32, #tpu.memory_space<vmem>>, vector<1x1x128xf32>
    %53 = vector.shape_cast %52 : vector<1x1x128xf32> to vector<1x128xf32>
    %cst_29 = arith.constant dense<0xFF800000> : vector<128xf32>
    %54 = vector.multi_reduction <maximumf>, %51, %cst_29 [0] : vector<128x128xf32> to vector<128xf32>
    %55 = vector.shape_cast %54 : vector<128xf32> to vector<1x128xf32>
    %56 = arith.maximumf %53, %55 : vector<1x128xf32>
    %57 = arith.subf %53, %56 : vector<1x128xf32>
    %58 = math.exp %57 : vector<1x128xf32>
    %59 = vector.broadcast %56 : vector<1x128xf32> to vector<128x128xf32>
    %60 = arith.subf %51, %59 : vector<128x128xf32>
    %61 = math.exp %60 : vector<128x128xf32>
    %c1_30 = arith.constant 1 : index
    %c0_31 = arith.constant 0 : index
    %c0_32 = arith.constant 0 : index
    %62 = vector.load %arg10[%c1_30, %c0_31, %c0_32] : memref<2x1x128xf32, #tpu.memory_space<vmem>>, vector<1x1x128xf32>
    %63 = vector.shape_cast %62 : vector<1x1x128xf32> to vector<1x128xf32>
    %64 = arith.mulf %58, %63 : vector<1x128xf32>
    %cst_33 = arith.constant dense<0.000000e+00> : vector<128xf32>
    %65 = vector.multi_reduction <add>, %61, %cst_33 [0] : vector<128x128xf32> to vector<128xf32>
    %66 = vector.shape_cast %65 : vector<128xf32> to vector<1x128xf32>
    %67 = arith.addf %64, %66 : vector<1x128xf32>
    %c1_34 = arith.constant 1 : index
    %c0_35 = arith.constant 0 : index
    %c0_36 = arith.constant 0 : index
    %68 = vector.load %arg10[%c1_34, %c0_35, %c0_36] : memref<2x1x128xf32, #tpu.memory_space<vmem>>, vector<1x1x128xf32>
    %69 = vector.shape_cast %68 : vector<1x1x128xf32> to vector<1x128xf32>
    %70 = vector.shape_cast %67 : vector<1x128xf32> to vector<1x1x128xf32>
    tpu.vector_store %arg10[%c1_34, %c0_35, %c0_36], %70 {strides = array<i32>} : memref<2x1x128xf32, #tpu.memory_space<vmem>>, vector<1x1x128xf32>,
    %71 = arith.truncf %50 : vector<8x128xf32> to vector<8x128xbf16>
    %72 = arith.truncf %61 : vector<128x128xf32> to vector<128x128xbf16>
    %cst_37 = arith.constant dense<0.000000e+00> : vector<8x128xf32>
    %73 = tpu.matmul %71, %72, %cst_37 {dimension_numbers = #tpu.dot_dimension_numbers<[1], [0], [0], [1], [0, 0, 1, 1], [], []>} : vector<8x128xbf16>, vector<128x128xbf16>, vector<8x128xf32> -> vector<8x128xf32>
    %c8 = arith.constant 8 : index
    %c0_38 = arith.constant 0 : index
    %74 = vector.load %arg11[%c8, %c0_38] : memref<16x128xf32, #tpu.memory_space<vmem>>, vector<8x128xf32>
    %75 = vector.broadcast %58 : vector<1x128xf32> to vector<8x128xf32>
    %76 = arith.mulf %75, %74 : vector<8x128xf32>
    %77 = arith.addf %76, %73 : vector<8x128xf32>
    %c8_39 = arith.constant 8 : index
    %c0_40 = arith.constant 0 : index
    %78 = vector.load %arg11[%c8_39, %c0_40] : memref<16x128xf32, #tpu.memory_space<vmem>>, vector<8x128xf32>
    tpu.vector_store %arg11[%c8_39, %c0_40], %77 {strides = array<i32>} : memref<16x128xf32, #tpu.memory_space<vmem>>, vector<8x128xf32>,
    %c1_41 = arith.constant 1 : index
    %c0_42 = arith.constant 0 : index
    %c0_43 = arith.constant 0 : index
    %79 = vector.load %arg9[%c1_41, %c0_42, %c0_43] : memref<2x1x128xf32, #tpu.memory_space<vmem>>, vector<1x1x128xf32>
    %80 = vector.shape_cast %79 : vector<1x1x128xf32> to vector<1x128xf32>
    %81 = vector.shape_cast %56 : vector<1x128xf32> to vector<1x1x128xf32>
    tpu.vector_store %arg9[%c1_41, %c0_42, %c0_43], %81 {strides = array<i32>} : memref<2x1x128xf32, #tpu.memory_space<vmem>>, vector<1x1x128xf32>,
    %c1_i32 = arith.constant 1 : i32
    %82 = arith.cmpi eq, %arg2, %c1_i32 : i32
    %83 = arith.extui %82 : i1 to i32
    %c0_i32_44 = arith.constant 0 : i32
    %84 = arith.cmpi ne, %83, %c0_i32_44 : i32
    scf.if %84 {
      %c0_45 = arith.constant 0 : index
      %c0_46 = arith.constant 0 : index
      %c0_47 = arith.constant 0 : index
      %85 = vector.load %arg10[%c0_45, %c0_46, %c0_47] : memref<2x1x128xf32, #tpu.memory_space<vmem>>, vector<2x1x128xf32>
      %86 = tpu.reciprocal %85 : vector<2x1x128xf32> -> vector<2x1x128xf32>
      %c0_48 = arith.constant 0 : index
      %c0_49 = arith.constant 0 : index
      %87 = vector.load %arg11[%c0_48, %c0_49] : memref<16x128xf32, #tpu.memory_space<vmem>>, vector<16x128xf32>
      %88 = vector.shape_cast %87 : vector<16x128xf32> to vector<2x8x128xf32>
      %89 = vector.broadcast %86 : vector<2x1x128xf32> to vector<2x8x128xf32>
      %90 = arith.mulf %88, %89 : vector<2x8x128xf32>
      %c0_50 = arith.constant 0 : index
      %c0_51 = arith.constant 0 : index
      %91 = vector.load %arg6[%c0_50, %c0_51] : memref<4x16xf32, #tpu.memory_space<vmem>>, vector<4x16xf32>
      %92 = vector.shape_cast %90 : vector<2x8x128xf32> to vector<16x128xf32>
      %cst_52 = arith.constant dense<0.000000e+00> : vector<4x128xf32>
      %93 = tpu.matmul %91, %92, %cst_52 {dimension_numbers = #tpu.dot_dimension_numbers<[1], [0], [0], [1], [0, 0, 1, 1], [], []>} : vector<4x16xf32>, vector<16x128xf32>, vector<4x128xf32> -> vector<4x128xf32>
      %c0_53 = arith.constant 0 : index
      %c0_54 = arith.constant 0 : index
      %94 = vector.load %arg7[%c0_53, %c0_54] : memref<4x1xf32, #tpu.memory_space<vmem>>, vector<4x1xf32>
      %95 = vector.broadcast %94 : vector<4x1xf32> to vector<4x128xf32>
      %96 = arith.addf %93, %95 : vector<4x128xf32>
      %c0_55 = arith.constant 0 : index
      %c0_56 = arith.constant 0 : index
      %c0_57 = arith.constant 0 : index
      %97 = vector.load %arg8[%c0_55, %c0_56, %c0_57] : memref<1x4x128xf32, #tpu.memory_space<vmem>>, vector<1x4x128xf32>
      %98 = vector.shape_cast %97 : vector<1x4x128xf32> to vector<4x128xf32>
      %99 = vector.shape_cast %96 : vector<4x128xf32> to vector<1x4x128xf32>
      tpu.vector_store %arg8[%c0_55, %c0_56, %c0_57], %99 {strides = array<i32>} : memref<1x4x128xf32, #tpu.memory_space<vmem>>, vector<1x4x128xf32>,
    } else {
    }
    return
  }
  func.func @transform_0(%arg0: i32, %arg1: i32, %arg2: i32) -> (i32, i32, i32) {
    %c0_i32 = arith.constant 0 : i32
    %c0_i32_0 = arith.constant 0 : i32
    return %arg0, %c0_i32, %arg1 : i32, i32, i32
  }
  func.func @transform_1(%arg0: i32, %arg1: i32, %arg2: i32) -> (i32, i32, i32) {
    %c0_i32 = arith.constant 0 : i32
    %c0_i32_0 = arith.constant 0 : i32
    return %arg0, %c0_i32, %arg2 : i32, i32, i32
  }
  func.func @transform_2(%arg0: i32, %arg1: i32, %arg2: i32) -> (i32, i32) {
    %c0_i32 = arith.constant 0 : i32
    %c0_i32_0 = arith.constant 0 : i32
    %c0_i32_1 = arith.constant 0 : i32
    return %c0_i32, %c0_i32_0 : i32, i32
  }
  func.func @transform_3(%arg0: i32, %arg1: i32, %arg2: i32) -> (i32, i32) {
    %c0_i32 = arith.constant 0 : i32
    %c0_i32_0 = arith.constant 0 : i32
    %c0_i32_1 = arith.constant 0 : i32
    return %c0_i32, %c0_i32_0 : i32, i32
  }
  func.func @transform_4(%arg0: i32, %arg1: i32, %arg2: i32) -> (i32, i32) {
    %c0_i32 = arith.constant 0 : i32
    %c0_i32_0 = arith.constant 0 : i32
    %c0_i32_1 = arith.constant 0 : i32
    return %c0_i32, %c0_i32_0 : i32, i32
  }
  func.func @transform_5(%arg0: i32, %arg1: i32, %arg2: i32) -> (i32, i32, i32) {
    %c0_i32 = arith.constant 0 : i32
    %c0_i32_0 = arith.constant 0 : i32
    return %arg0, %c0_i32, %arg1 : i32, i32, i32
  }
}

</mosaic_0001>

<bundles_post_ra>
// kernel: tpu_custom_call.1
= control target key start
LH: loop header
LB: loop body
LE: loop exit
PB: predicated region body
PF: predicated region fallthrough
CT: control target
= control target key end

     0   :  { %10 = vsyncpa [#allocation8], 0  ;;  %s1891_s0 = inlined_call_operand.vmem [shape: f32[2,4,256], index: 0, kind: input, shape index: {}]   ;;  %s1892_s1 = inlined_call_operand.vmem [shape: f32[2,4,256], index: 1, kind: input, shape index: {}]   ;;  %s1893_s2 = inlined_call_operand.vmem [shape: f32[48,4], index: 2, kind: input, shape index: {}]   ;;  %s1894_s3 = inlined_call_operand.vmem [shape: f32[4,16], index: 3, kind: input, shape index: {}]   ;;  %s1895_s4 = inlined_call_operand.vmem [shape: f32[4,1], index: 4, kind: input, shape index: {}]   ;;  %s1896_s5 = inlined_call_operand.hbm [shape: f32[2,4,256], index: 5, kind: output, shape index: {}]  }
   0x1   :  { %12 = vsyncpa [#allocation8 + $0x1], 0  ;;  %s1545_s18 = smov 0   ;;  %s1547_s19 = smov 0  }
   0x2   :  { %s1549_s20 = smov 0   ;;  %s1551_s21 = smov 0  }
   0x3   :  { %s1553_s22 = smov 0   ;;  %s1555_s23 = smov 0  }
   0x4   :  { %s1557_s24 = smov 0   ;;  %s1559_s25 = smov 0  }
   0x5   :  { %s1561_s26 = smov 0   ;;  %s1563_s27 = smov 0  }
   0x6 LB: > { %1905 = sst [smem:[#allocation10_spill]] %s1482_s20  ;;  %s1168_s28 = sadd.s32 4294967295, %s1510_s27   ;;  %s1510_s27 = sphi %s1563_s27, %s18_s27   ;;  %s1506_s26 = sphi %s1561_s26, %s1925_s26   ;;  %s1502_s25 = sphi %s1559_s25, %s1924_s25   ;;  %s1498_s24 = sphi %s1557_s24, %s1923_s24   ;;  %s1494_s23 = sphi %s1555_s23, %s1922_s23   ;;  %s1490_s22 = sphi %s1553_s22, %s1921_s22   ;;  %s1486_s21 = sphi %s1551_s21, %s1920_s21   ;;  %s1482_s20 = sphi %s1549_s20, %s1919_s20   ;;  %s1478_s19 = sphi %s1547_s19, %s1927_s19   ;;  %s1474_s18 = sphi %s1545_s18, %s1926_s18  }
   0x7   : > { %1906 = sst [smem:[#allocation11_spill]] %s1498_s24  ;;  %s1169_s29 = sadd.s32 4294967294, %s1510_s27  }
   0x8   : > { %1907 = sst [smem:[#allocation12_spill]] %s1502_s25  ;;  %s30_s30 = sadd.s32 1, %s1498_s24 }
   0x9   : > { %1908 = sst [smem:[#allocation13_spill]] %s1506_s26  ;;  %p31_p0 = scmp.ge.s32.totalorder %s30_s30, 2 }
   0xa   : > { %s33_s6 = sadd.s32 1, %s1502_s25  ;;  %s37_s7 = sadd.s32 1, %s1506_s26 }
   0xb   : > { %p175_p1 = scmp.ne.s32.totalorder %s1482_s20, %s1478_s19  ;;  %s1929_s30 = smov (%p31_p0, %s30_s30), 0 }
   0xc   : > { %1909 = sst [smem:[#allocation14_spill]] %s1929_s30  ;;  %s1931_s6 = smov (!%p31_p0, %s33_s6), %s1502_s25 }
   0xd   : > { %p176_p2 = scmp.eq.s32.totalorder %s1168_s28, 7  ;;  %p181_p3 = scmp.ne.s32.totalorder %s1478_s19, %s1474_s18 }
   0xe   : > { %p35_p4 = scmp.ge.s32.totalorder %s1931_s6, 2  ;;  %p182_p5 = scmp.eq.s32.totalorder %s1169_s29, 7 }
   0xf   : > { %p1607_p6 = por %p176_p2, %p175_p1  ;;  %p1172_p8 = scmp.ge.s32.totalorder %s1510_s27, 1 }
  0x10   : > { %s1933_s6 = smov (%p35_p4, %s1931_s6), 0  ;;  %s1935_s7 = smov (!%p35_p4, %s37_s7), %s1506_s26 }
  0x11   : > { %1911 = sst [smem:[#allocation15_spill]] %s1933_s6  ;;  %p1614_p7 = por %p182_p5, %p181_p3 }
  0x12   : > { %p39_p9 = scmp.ge.s32.totalorder %s1935_s7, 2  ;;  %p231_p10 = scmp.lt.s32.totalorder %s1510_s27, 9 }
  0x13   : > { %s1912_s9 = scalar_select %p1614_p7, 1, 0 }
  0x14   : > { %s161_s10 = ssub.s32 %s1502_s25, %s1933_s6  ;;  %s1937_s7 = smov (%p39_p9, %s1935_s7), 0 }
  0x15   : > { %1913 = sst [smem:[#allocation16_spill]] %s1912_s9  ;;  %p232_p11 = pnand %p1172_p8, %p231_p10 }
  0x16   : > { %1914 = sst [smem:[#allocation17_spill]] %s1937_s7  ;;  %s160_s11 = ssub.s32 %s1506_s26, %s1937_s7 }
  0x17   : > { %s162_s12 = sor.u32 %s161_s10, %s160_s11  ;;  %s165_s13 = sadd.s32 1, %s1482_s20 }
  0x18   : > { %p163_p12 = scmp.eq.s32.totalorder %s162_s12, 0  ;;  %235 = sbr.rel (%p232_p11) target bundleno = 1234 (0x4d2), region = 40 }
  0x19   : > { %s1899_s15 = sand.u32 (!%p232_p11), 1, %s1478_s19   ;;  %p270_p13 = scmp.lt.s32.totalorder (!%p232_p11), %s1494_s23, 1 }
  0x1a   : > { %s1628_s14 = scalar_select %p163_p12, %s1482_s20, %s165_s13  }
  0x1b   : > { %s1643_s12 = sshll.u32 (!%p232_p11), %s1899_s15, 2  ;;  %p272_p0 = scmp.lt.s32.totalorder (!%p232_p11), %s1490_s22, 1 }
  0x1c   : > { %1915 = sst [smem:[#allocation18_spill]] %s1628_s14  ;;  %p280_p1 = scmp.lt.s32.totalorder (!%p232_p11), %s1486_s21, 1 }
  0x1d   : > { %v286_v0 = vld [vmem:[%s1893_s2] sm:$0xff]  ;;  %v287_v1 = vld [vmem:[%s1893_s2 + $0x8] sm:$0xff]  ;;  %v288_v2 = vld [vmem:[%s1893_s2 + $0x10] sm:$0xff]  ;;  %s271_s29 = scalar_select %p270_p13, %s1494_s23, 1 }
  0x1e   : > { %v289_v3 = vld [vmem:[%s1893_s2 + $0x18] sm:$0xff]  ;;  %v290_v4 = vld [vmem:[%s1893_s2 + $0x20] sm:$0xff]  ;;  %v291_v5 = vld [vmem:[%s1893_s2 + $0x28] sm:$0xff]  ;;  %s273_s10 = scalar_select %p272_p0, %s1490_s22, 1 }
  0x1f   : > { %s1174_s11 = sshll.u32 %s271_s29, 1  ;;  %s269_s9 = scalar_lea.vmem [#allocation7], %s1643_s12 }
  0x20   : > { %s275_s15 = sadd.s32 %s1174_s11, %s273_s10  ;;  %p1178_p2 = scmp.ne.s32.totalorder %s1486_s21, 0 }
  0x21   : > { %s1175_s30 = sshll.u32 %s275_s15, 2 }
  0x22   : > { %s277_s24 = scalar_lea.vmem %s1891_s0, %s1175_s30 }
  0x23   : > { %s281_s7 = scalar_select %p280_p1, %s1486_s21, 1 }
  0x24   : > { %295 = sbr.rel (%p1178_p2) target bundleno = 173 (0xad), region = 44 }
  0x25   : > { %s283_s13 = sadd.s32 %s1174_s11, %s281_s7 }
  0x26   : > { %s1177_s14 = sshll.u32 %s283_s13, 2 }
  0x27   : > { %s285_s17 = scalar_lea.vmem %s1892_s1, %s1177_s14 }
  0x29   : > { %v302_v6 = vld [vmem:[%s277_s24] sm:$0xf]  ;;  %vm310_vm0 = vcmask 1043456   ;;  %vm303_vm1 = vcmask 31744   ;;  %v1512_v7 = vmov -inf   ;;  %v1513_v8 = vmov 0.0  }
  0x2a   : > { %296 = vst [vmem:[#allocation2] sm:$0x1] %v1512_v7  ;;  %1179 = vmatpush.msk.msra.mxu0 %vm310_vm0, %v302_v6  ;;  %1230 = vmatpush.msk.msra.mxu1 %vm310_vm0, %v302_v6 }
  0x2b   : > { %297 = vst [vmem:[#allocation2 + $0x1] sm:$0x1] %v1512_v7  ;;  %1180 = vmatmul.msk.f32.vlgmr.msra.gmra.mxu0 %vm303_vm1, %v286_v0  ;;  %1181 = vmatmul.msk.f32.vlgmr.msra.gmra.mxu1 %vm303_vm1, %v287_v1 }
  0x2c   : > { %298 = vst [vmem:[#allocation3] sm:$0x1] %v1513_v8 }
  0x2d   : > { %299 = vst [vmem:[#allocation3 + $0x1] sm:$0x1] %v1513_v8 }
  0x2e   : > { %300 = vst [vmem:[#allocation4] sm:$0xff] %v1513_v8 }
  0x2f   : > { %301 = vst [vmem:[#allocation4 + $0x8] sm:$0xff] %v1513_v8 }
  0xa8   : > { %v331_v9 = vpop.f32.mrf.mxu0  ;;  %v334_v10 = vpop.f32.mrf.mxu1 }
  0xa9   : > { %v337_v11 = vmul.f32 0.35355338, %v331_v9  ;;  %v338_v12 = vmul.f32 0.35355338, %v334_v10 }
  0xab   : > { %339 = vst [vmem:[#allocation5 + $0x8] sm:$0xff] %v337_v11 }
  0xac   : > { %340 = vst [vmem:[#allocation5] sm:$0xff] %v338_v12 }
  0xad PF: > { %s1182_s20 = sshll.u32 %s1486_s21, 7  ;;  %p1183_p3 = scmp.ne.s32.totalorder %s1490_s22, 0 }
  0xae   : > { %s393_s24 = sshra.s32 (!%p1183_p3), %s1182_s20, 7 }
  0xaf   : > { %345 = sbr.rel (%p1183_p3) target bundleno = 316 (0x13c), region = 48  ;;  %s1189_s25 = sshll.u32 (!%p1183_p3), %s393_s24, 3 }
  0xb0   : > { %s396_s26 = scalar_lea.vmem (!%p1183_p3), [#allocation6], %s1189_s25 }
  0xb4   : > { %v346_v13 = vld [vmem:[%s285_s17] sm:$0xf]  ;;  %vm360_vm2 = vcmask 1043456   ;;  %vm347_vm3 = vcmask 31744  }
  0xb5   : > { %1232 = vmatpush.msk.msra.mxu2 %vm360_vm2, %v346_v13  ;;  %1233 = vmatpush.msk.msra.mxu3 %vm360_vm2, %v346_v13 }
  0xb6   : > { %1187 = vmatmul.msk.f32.vlgmr.msra.gmra.mxu2 %vm347_vm3, %v290_v4  ;;  %1188 = vmatmul.msk.f32.vlgmr.msra.gmra.mxu3 %vm347_vm3, %v291_v5 }
  0xb7   : > { %1184 = vmatpush.msk.msra.mxu0 %vm360_vm2, %v346_v13  ;;  %1231 = vmatpush.msk.msra.mxu1 %vm360_vm2, %v346_v13 }
  0xb8   : > { %1185 = vmatmul.msk.f32.vlgmr.msra.gmra.mxu0 %vm347_vm3, %v288_v2  ;;  %1186 = vmatmul.msk.f32.vlgmr.msra.gmra.mxu1 %vm347_vm3, %v289_v3 }
 0x135   : > { %v381_v14 = vpop.f32.mrf.mxu0  ;;  %v384_v15 = vpop.f32.mrf.mxu1 }
 0x136   : > { %397 = vst [vmem:[%s396_s26] sm:$0xff] %v381_v14 }
 0x137   : > { %398 = vst [vmem:[%s396_s26 + $0x10] sm:$0xff] %v384_v15 }
 0x139   : > { %v387_v16 = vpop.f32.mrf.mxu2  ;;  %v390_v17 = vpop.f32.mrf.mxu3 }
 0x13a   : > { %399 = vst [vmem:[%s396_s26 + $0x20] sm:$0xff] %v387_v16 }
 0x13b   : > { %400 = vst [vmem:[%s396_s26 + $0x30] sm:$0xff] %v390_v17 }
 0x13c PF: > { %s401_s30 = sshra.s32 %s1182_s20, 7  ;;  %v410_v19 = vld [vmem:[#allocation5] sm:$0xff]  ;;  %vm443_vm4 = vcmask 64512   ;;  %v409_v33 = vld [vmem:[#allocation5 + $0x8] sm:$0xff]  ;;  %p1223_p4 = scmp.ne.s32.totalorder %s1486_s21, 1 }
 0x13d   : > { %s1190_s6 = sshll.u32 %s401_s30, 3  ;;  %784 = vmatpush.msra.mxu2 %v410_v19  ;;  %1235 = vmatpush.msra.mxu3 %v410_v19 }
 0x13e   : > { %s1669_s14 = scalar_lea.vmem [#allocation6], %s1190_s6  ;;  %507 = vmatpush.msra.mxu0 %v409_v33  ;;  %1234 = vmatpush.msra.mxu1 %v409_v33 }
 0x142   : > { %v406_v18 = vld [vmem:[%s1669_s14 + $0x10] sm:$0xff]  ;;  %v405_v20 = vld [vmem:[%s1669_s14] sm:$0xff] }
 0x143   : > { %689 = vxpose.xlu0.b32.start.end [1/1] (short) %v406_v18, 128 }
 0x1c3   : > { %411 = vxpose.xlu0.b32.start.end [1/1] (short) %v405_v20, 128 }
 0x1e7   : > { %v705_v21 = vpop.trf.xlu0 }
 0x1e8   : > { %1207 = vmatmul.msk.f32.vlgmr.msra.gmra.mxu2 %vm443_vm4, %v705_v21 }
 0x1ef   : > { %v706_v22 = vpop.trf.xlu0 }
 0x1f0   : > { %1208 = vmatmul.msk.f32.gmra.mxu2 %vm443_vm4, %v706_v22 }
 0x1f7   : > { %v707_v23 = vpop.trf.xlu0 }
 0x1f8   : > { %1209 = vmatmul.msk.f32.gmra.mxu2 %vm443_vm4, %v707_v23 }
 0x1ff   : > { %v708_v24 = vpop.trf.xlu0 }
 0x200   : > { %1210 = vmatmul.msk.f32.gmra.mxu2 %vm443_vm4, %v708_v24 }
 0x207   : > { %v709_v25 = vpop.trf.xlu0 }
 0x208   : > { %1211 = vmatmul.msk.f32.gmra.mxu2 %vm443_vm4, %v709_v25 }
 0x20f   : > { %v710_v26 = vpop.trf.xlu0 }
 0x210   : > { %1212 = vmatmul.msk.f32.gmra.mxu2 %vm443_vm4, %v710_v26  ;;  %v1732_v26 = vld [vmem:[#allocation2 + $0x1] sm:$0x1] }
 0x217   : > { %v711_v27 = vpop.trf.xlu0 }
 0x218   : > { %1213 = vmatmul.msk.f32.gmra.mxu2 %vm443_vm4, %v711_v27 }
 0x21f   : > { %v712_v28 = vpop.trf.xlu0 }
 0x220   : > { %1214 = vmatmul.msk.f32.gmra.mxu2 %vm443_vm4, %v712_v28 }
 0x227   : > { %v713_v29 = vpop.trf.xlu0 }
 0x228   : > { %1215 = vmatmul.msk.f32.gmra.mxu2 %vm443_vm4, %v713_v29 }
 0x22f   : > { %v714_v30 = vpop.trf.xlu0 }
 0x230   : > { %1216 = vmatmul.msk.f32.vlgmr.msra.gmra.mxu3 %vm443_vm4, %v714_v30 }
 0x237   : > { %v715_v31 = vpop.trf.xlu0 }
 0x238   : > { %1217 = vmatmul.msk.f32.gmra.mxu3 %vm443_vm4, %v715_v31 }
 0x23f   : > { %v716_v32 = vpop.trf.xlu0 }
 0x240   : > { %1218 = vmatmul.msk.f32.gmra.mxu3 %vm443_vm4, %v716_v32 }
 0x247   : > { %v717_v34 = vpop.trf.xlu0 }
 0x248   : > { %1219 = vmatmul.msk.f32.gmra.mxu3 %vm443_vm4, %v717_v34 }
 0x24f   : > { %v718_v35 = vpop.trf.xlu0 }
 0x250   : > { %1220 = vmatmul.msk.f32.gmra.mxu3 %vm443_vm4, %v718_v35 }
 0x257   : > { %v719_v36 = vpop.trf.xlu0 }
 0x258   : > { %1221 = vmatmul.msk.f32.gmra.mxu3 %vm443_vm4, %v719_v36 }
 0x25f   : > { %v720_v37 = vpop.trf.xlu0 }
 0x260   : > { %1222 = vmatmul.msk.f32.gmra.mxu3 %vm443_vm4, %v720_v37 }
 0x267   : > { %v427_v38 = vpop.trf.xlu0 }
 0x268   : > { %1191 = vmatmul.msk.f32.vlgmr.msra.gmra.mxu0 %vm443_vm4, %v427_v38 }
 0x26b   : > { %v1694_v43 = vpop.f32.mrf.mxu2 }
 0x26f   : > { %v428_v39 = vpop.trf.xlu0 }
 0x270   : > { %1192 = vmatmul.msk.f32.gmra.mxu0 %vm443_vm4, %v428_v39 }
 0x273   : > { %v1698_v46 = vpop.f32.mrf.mxu2 }
 0x277   : > { %v429_v40 = vpop.trf.xlu0 }
 0x278   : > { %1193 = vmatmul.msk.f32.gmra.mxu0 %vm443_vm4, %v429_v40 }
 0x27b   : > { %v1701_v48 = vpop.f32.mrf.mxu2 }
 0x27f   : > { %v430_v41 = vpop.trf.xlu0 }
 0x280   : > { %1194 = vmatmul.msk.f32.gmra.mxu0 %vm443_vm4, %v430_v41 }
 0x283   : > { %v1704_v50 = vpop.f32.mrf.mxu2 }
 0x287   : > { %v431_v42 = vpop.trf.xlu0 }
 0x288   : > { %1195 = vmatmul.msk.f32.gmra.mxu0 %vm443_vm4, %v431_v42 }
 0x28b   : > { %v1709_v53 = vpop.f32.mrf.mxu2 }
 0x28c   : > { %v836_v6 = vmax.f32 %v1694_v43, %v1709_v53 }
 0x28f   : > { %v432_v44 = vpop.trf.xlu0 }
 0x290   : > { %1196 = vmatmul.msk.f32.gmra.mxu0 %vm443_vm4, %v432_v44 }
 0x293   : > { %v1713_v57 = vpop.f32.mrf.mxu2 }
 0x294   : > { %v837_v3 = vmax.f32 %v1698_v46, %v1713_v57 }
 0x297   : > { %v433_v45 = vpop.trf.xlu0 }
 0x298   : > { %1197 = vmatmul.msk.f32.gmra.mxu0 %vm443_vm4, %v433_v45 }
 0x29b   : > { %v1716_v60 = vpop.f32.mrf.mxu2 }
 0x29c   : > { %v838_v7 = vmax.f32 %v1701_v48, %v1716_v60 }
 0x29f   : > { %v434_v47 = vpop.trf.xlu0 }
 0x2a0   : > { %1198 = vmatmul.msk.f32.gmra.mxu0 %vm443_vm4, %v434_v47 }
 0x2a3   : > { %v1719_v0 = vpop.f32.mrf.mxu2 }
 0x2a4   : > { %v839_v8 = vmax.f32 %v1704_v50, %v1719_v0 }
 0x2a7   : > { %v435_v49 = vpop.trf.xlu0 }
 0x2a8   : > { %1199 = vmatmul.msk.f32.gmra.mxu0 %vm443_vm4, %v435_v49 }
 0x2ab   : > { %v810_v4 = vpop.f32.mrf.mxu2 }
 0x2ac   : > { %v840_v10 = vmax.f32 %v836_v6, %v810_v4 }
 0x2af   : > { %v436_v51 = vpop.trf.xlu0 }
 0x2b0   : > { %1200 = vmatmul.msk.f32.gmra.mxu0 %vm443_vm4, %v436_v51 }
 0x2b3   : > { %v1707_v52 = vpop.f32.mrf.mxu3 }
 0x2b4   : > { %v841_v9 = vmax.f32 %v837_v3, %v1707_v52 }
 0x2b7   : > { %v437_v54 = vpop.trf.xlu0 }
 0x2b8   : > { %1201 = vmatmul.msk.f32.vlgmr.msra.gmra.mxu1 %vm443_vm4, %v437_v54 }
 0x2bb   : > { %v816_v55 = vpop.f32.mrf.mxu3 }
 0x2bc   : > { %v842_v11 = vmax.f32 %v838_v7, %v816_v55 }
 0x2bf   : > { %v438_v56 = vpop.trf.xlu0 }
 0x2c0   : > { %1202 = vmatmul.msk.f32.gmra.mxu1 %vm443_vm4, %v438_v56 }
 0x2c3   : > { %v819_v58 = vpop.f32.mrf.mxu3 }
 0x2c4   : > { %v843_v12 = vmax.f32 %v839_v8, %v819_v58 }
 0x2c7   : > { %v439_v59 = vpop.trf.xlu0 }
 0x2c8   : > { %1203 = vmatmul.msk.f32.gmra.mxu1 %vm443_vm4, %v439_v59 }
 0x2cb   : > { %v822_v61 = vpop.f32.mrf.mxu3 }
 0x2cc   : > { %v844_v15 = vmax.f32 %v840_v10, %v822_v61 }
 0x2cf   : > { %v440_v62 = vpop.trf.xlu0 }
 0x2d0   : > { %1204 = vmatmul.msk.f32.gmra.mxu1 %vm443_vm4, %v440_v62 }
 0x2d3   : > { %v825_v63 = vpop.f32.mrf.mxu3 }
 0x2d4   : > { %v845_v13 = vmax.f32 %v841_v9, %v825_v63 }
 0x2d6   : > { %v848_v18 = vmax.f32 %v844_v15, %v845_v13 }
 0x2d7   : > { %v441_v1 = vpop.trf.xlu0 }
 0x2d8   : > { %1205 = vmatmul.msk.f32.gmra.mxu1 %vm443_vm4, %v441_v1 }
 0x2db   : > { %v828_v2 = vpop.f32.mrf.mxu3 }
 0x2dc   : > { %v846_v16 = vmax.f32 %v842_v11, %v828_v2 }
 0x2df   : > { %v442_v5 = vpop.trf.xlu0 }
 0x2e0   : > { %1206 = vmatmul.msk.f32.gmra.mxu1 %vm443_vm4, %v442_v5 }
 0x2e3   : > { %v831_v14 = vpop.f32.mrf.mxu3 }
 0x2e4   : > { %v847_v17 = vmax.f32 %v843_v12, %v831_v14 }
 0x2e5   : > { %v1739_v38 = vpop.f32.mrf.mxu0 }
 0x2e6   : > { %v849_v19 = vmax.f32 %v846_v16, %v847_v17 }
 0x2e8   : > { %v850_v20 = vmax.f32 %v848_v18, %v849_v19 }
 0x2ea   : > { %v851_v21 = vrot.slane %v850_v20, 4 }
 0x2ec   : > { %v852_v22 = vmax.f32 %v850_v20, %v851_v21 }
 0x2ee   : > { %v853_v23 = vrot.slane %v852_v22, 2 }
 0x2f0   : > { %v854_v24 = vmax.f32 %v852_v22, %v853_v23 }
 0x2f2   : > { %v855_v25 = vrot.slane %v854_v24, 1 }
 0x2f4   : > { %v856_v27 = vmax.f32 %v854_v24, %v855_v25 }
 0x2f6   : > { %v1735_v28 = vmax.f32 %v1732_v26, %v856_v27 }
 0x2f8   : > { %v862_v29 = vperm.slane %v1735_v28, 0  ;;  %967 = vst [vmem:[#allocation2 + $0x1] sm:$0x1] %v1735_v28 }
 0x2fa   : > { %v879_v30 = vsub.f32 %v831_v14, %v862_v29  ;;  %v878_v31 = vsub.f32 %v828_v2, %v862_v29  ;;  %v876_v32 = vsub.f32 %v822_v61, %v862_v29  ;;  %v877_v33 = vsub.f32 %v825_v63, %v862_v29 }
 0x2fb   : > { %v874_v37 = vsub.f32 %v816_v55, %v862_v29  ;;  %v875_v40 = vsub.f32 %v819_v58, %v862_v29  ;;  %v872_v42 = vsub.f32 %v810_v4, %v862_v29  ;;  %v873_v45 = vsub.f32 %v1707_v52, %v862_v29 }
 0x2fc   : > { %v910_v34 = vmul.f32 1.442695, %v879_v30  ;;  %v908_v35 = vmul.f32 1.442695, %v878_v31  ;;  %v904_v36 = vmul.f32 1.442695, %v876_v32  ;;  %v870_v47 = vsub.f32 %v1716_v60, %v862_v29 }
 0x2fd   : > { %v906_v39 = vmul.f32 1.442695, %v877_v33  ;;  %v900_v41 = vmul.f32 1.442695, %v874_v37  ;;  %v902_v44 = vmul.f32 1.442695, %v875_v40  ;;  %v871_v49 = vsub.f32 %v1719_v0, %v862_v29  ;;  %v1757_v0 = vpop.f32.mrf.mxu0 }
 0x2fe   : > { %1327 = vpow2.f32 %v910_v34  ;;  %v896_v54 = vmul.f32 1.442695, %v872_v42  ;;  %v864_v55 = vsub.f32 %v1694_v43, %v862_v29  ;;  %v898_v58 = vmul.f32 1.442695, %v873_v45  ;;  %v408_v34 = vld [vmem:[%s1669_s14 + $0x30] sm:$0xff] }
 0x2ff   : > { %1329 = vpow2.f32 %v908_v35  ;;  %v865_v59 = vsub.f32 %v1698_v46, %v862_v29  ;;  %v892_v60 = vmul.f32 1.442695, %v870_v47  ;;  %v868_v62 = vsub.f32 %v1709_v53, %v862_v29 }
 0x300   : > { %1331 = vpow2.f32 %v904_v36  ;;  %v894_v1 = vmul.f32 1.442695, %v871_v49  ;;  %v866_v43 = vsub.f32 %v1701_v48, %v862_v29  ;;  %v869_v2 = vsub.f32 %v1713_v57, %v862_v29 }
 0x301   : > { %1333 = vpow2.f32 %v906_v39  ;;  %v880_v46 = vmul.f32 1.442695, %v864_v55  ;;  %v867_v3 = vsub.f32 %v1704_v50, %v862_v29  ;;  %v882_v4 = vmul.f32 1.442695, %v865_v59 }
 0x302   : > { %1335 = vpow2.f32 %v900_v41  ;;  %v888_v6 = vmul.f32 1.442695, %v868_v62  ;;  %v884_v8 = vmul.f32 1.442695, %v866_v43  ;;  %v890_v48 = vmul.f32 1.442695, %v869_v2 }
 0x303   : > { %1337 = vpow2.f32 %v902_v44  ;;  %v886_v9 = vmul.f32 1.442695, %v867_v3  ;;  %v938_v37 = vpack.c.bf16 %v408_v34, %v408_v34  ;;  %v858_v45 = vsub.f32 %v1732_v26, %v1735_v28  ;;  %v913_v26 = vld [vmem:[#allocation3 + $0x1] sm:$0x1] }
 0x304   : > { %v1744_v51 = vpop.eup %1327  ;;  %1339 = vpow2.f32 %v896_v54 }
 0x305   : > { %v1747_v56 = vpop.eup %1329  ;;  %1341 = vpow2.f32 %v898_v58  ;;  %v1764_v13 = vpop.f32.mrf.mxu0  ;;  %v859_v55 = vmul.f32 1.442695, %v858_v45 }
 0x306   : > { %v1750_v61 = vpop.eup %1331  ;;  %v946_v52 = vpack.c.bf16 %v1744_v51, %v1747_v56  ;;  %1343 = vpow2.f32 %v892_v60 }
 0x307   : > { %v1755_v63 = vpop.eup %1333  ;;  %1345 = vpow2.f32 %v894_v1 }
 0x308   : > { %947 = vmatpush.bf16.msrb.mxu3 %v946_v52  ;;  %v1336_v5 = vpop.eup %1335  ;;  %v945_v53 = vpack.c.bf16 %v1755_v63, %v1750_v61  ;;  %1347 = vpow2.f32 %v880_v46 }
 0x309   : > { %v1338_v7 = vpop.eup %1337  ;;  %1349 = vpow2.f32 %v882_v4 }
 0x30a   : > { %v1340_v57 = vpop.eup %1339  ;;  %v944_v10 = vpack.c.bf16 %v1338_v7, %v1336_v5  ;;  %1351 = vpow2.f32 %v888_v6 }
 0x30b   : > { %v1342_v11 = vpop.eup %1341  ;;  %1353 = vpow2.f32 %v884_v8 }
 0x30c   : > { %948 = vmatpush.bf16.msrb.mxu3 %v945_v53  ;;  %v1344_v50 = vpop.eup %1343  ;;  %1355 = vpow2.f32 %v890_v48  ;;  %v943_v15 = vpack.c.bf16 %v1342_v11, %v1340_v57 }
 0x30d   : > { %v1346_v12 = vpop.eup %1345  ;;  %1357 = vpow2.f32 %v886_v9  ;;  %v1766_v29 = vpop.f32.mrf.mxu0 }
 0x30e   : > { %v1348_v14 = vpop.eup %1347  ;;  %v942_v21 = vpack.c.bf16 %v1346_v12, %v1344_v50  ;;  %1359 = vpow2.f32 %v859_v55 }
 0x30f   : > { %v1350_v16 = vpop.eup %1349 }
 0x310   : > { %949 = vmatpush.bf16.msrb.mxu3 %v944_v10  ;;  %v1352_v17 = vpop.eup %1351  ;;  %v915_v18 = vadd.f32 %v1350_v16, %v1348_v14  ;;  %v939_v36 = vpack.c.bf16 %v1350_v16, %v1348_v14 }
 0x311   : > { %v1354_v19 = vpop.eup %1353 }
 0x312   : > { %v1356_v20 = vpop.eup %1355  ;;  %v916_v22 = vadd.f32 %v1354_v19, %v915_v18 }
 0x313   : > { %v1358_v23 = vpop.eup %1357  ;;  %v941_v25 = vpack.c.bf16 %v1356_v20, %v1352_v17 }
 0x314   : > { %950 = vmatpush.bf16.msrb.mxu3 %v943_v15  ;;  %v917_v24 = vadd.f32 %v1358_v23, %v916_v22  ;;  %v940_v31 = vpack.c.bf16 %v1358_v23, %v1354_v19  ;;  %v1779_v43 = vpop.eup %1359 }
 0x315   : > { %v1769_v40 = vpop.f32.mrf.mxu0 }
 0x316   : > { %v918_v27 = vadd.f32 %v1352_v17, %v917_v24  ;;  %v558_v8 = vmax.f32 %v1739_v38, %v1769_v40 }
 0x318   : > { %951 = vmatpush.bf16.msrb.mxu3 %v942_v21  ;;  %v919_v30 = vadd.f32 %v1356_v20, %v918_v27  ;;  %v1794_v27 = vld [vmem:[#allocation2] sm:$0x1] }
 0x31a   : > { %v920_v32 = vadd.f32 %v1344_v50, %v919_v30 }
 0x31c   : > { %952 = vmatpush.bf16.msrb.mxu3 %v941_v25  ;;  %v921_v33 = vadd.f32 %v1346_v12, %v920_v32 }
 0x31d   : > { %v1776_v54 = vpop.f32.mrf.mxu0 }
 0x31e   : > { %v922_v35 = vadd.f32 %v1340_v57, %v921_v33 }
 0x320   : > { %953 = vmatpush.bf16.msrb.mxu3 %v940_v31  ;;  %v923_v39 = vadd.f32 %v1342_v11, %v922_v35 }
 0x322   : > { %v924_v41 = vadd.f32 %v1336_v5, %v923_v39 }
 0x324   : > { %954 = vmatpush.bf16.msrb.mxu3 %v939_v36  ;;  %v925_v42 = vadd.f32 %v1338_v7, %v924_v41  ;;  %v559_v7 = vmax.f32 %v1757_v0, %v1776_v54 }
 0x326   : > { %v926_v44 = vadd.f32 %v1750_v61, %v925_v42  ;;  %v1781_v61 = vpop.f32.mrf.mxu0 }
 0x327   : > { %955 = vmatmul.bf16.vlgmr.msrb.gmra.mxu3 %v938_v37  ;;  %v560_v48 = vmax.f32 %v1764_v13, %v1781_v61 }
 0x328   : > { %v927_v47 = vadd.f32 %v1755_v63, %v926_v44 }
 0x32a   : > { %v928_v49 = vadd.f32 %v1747_v56, %v927_v47  ;;  %v914_v56 = vmul.f32 %v1779_v43, %v913_v26 }
 0x32c   : > { %v929_v58 = vadd.f32 %v1744_v51, %v928_v49 }
 0x32e   : > { %v930_v59 = vrot.slane %v929_v58, 4  ;;  %v1784_v3 = vpop.f32.mrf.mxu0 }
 0x32f   : > { %v561_v9 = vmax.f32 %v1766_v29, %v1784_v3 }
 0x330   : > { %v931_v52 = vadd.f32 %v930_v59, %v929_v58 }
 0x332   : > { %v932_v62 = vrot.slane %v931_v52, 2 }
 0x334   : > { %v933_v1 = vadd.f32 %v932_v62, %v931_v52 }
 0x335   : > { %v539_v60 = vpop.f32.mrf.mxu1 }
 0x336   : > { %v934_v28 = vrot.slane %v933_v1, 1  ;;  %v533_v4 = vpop.f32.mrf.mxu0  ;;  %v564_v11 = vmax.f32 %v560_v48, %v539_v60 }
 0x337   : > { %v562_v10 = vmax.f32 %v558_v8, %v533_v4 }
 0x338   : > { %v935_v63 = vadd.f32 %v934_v28, %v933_v1 }
 0x33a   : > { %v936_v46 = vadd.f32 %v935_v63, %v914_v56 }
 0x33c   : > { %937 = vst [vmem:[#allocation3 + $0x1] sm:$0x1] %v936_v46 }
 0x33d   : > { %v542_v2 = vpop.f32.mrf.mxu1 }
 0x33e   : > { %v536_v6 = vpop.f32.mrf.mxu0  ;;  %v565_v50 = vmax.f32 %v561_v9, %v542_v2 }
 0x33f   : > { %v563_v57 = vmax.f32 %v559_v7, %v536_v6 }
 0x345   : > { %v545_v51 = vpop.f32.mrf.mxu1 }
 0x346   : > { %v566_v15 = vmax.f32 %v562_v10, %v545_v51 }
 0x34d   : > { %v548_v5 = vpop.f32.mrf.mxu1 }
 0x34e   : > { %v567_v12 = vmax.f32 %v563_v57, %v548_v5 }
 0x350   : > { %v570_v18 = vmax.f32 %v566_v15, %v567_v12 }
 0x355   : > { %v551_v53 = vpop.f32.mrf.mxu1 }
 0x356   : > { %v568_v16 = vmax.f32 %v564_v11, %v551_v53 }
 0x35d   : > { %v554_v14 = vpop.f32.mrf.mxu1 }
 0x35e   : > { %v569_v17 = vmax.f32 %v565_v50, %v554_v14 }
 0x360   : > { %v571_v19 = vmax.f32 %v568_v16, %v569_v17 }
 0x362   : > { %v572_v20 = vmax.f32 %v570_v18, %v571_v19 }
 0x364   : > { %v573_v21 = vrot.slane %v572_v20, 4 }
 0x366   : > { %v574_v22 = vmax.f32 %v572_v20, %v573_v21 }
 0x368   : > { %v575_v23 = vrot.slane %v574_v22, 2 }
 0x36a   : > { %v576_v24 = vmax.f32 %v574_v22, %v575_v23 }
 0x36c   : > { %v577_v25 = vrot.slane %v576_v24, 1 }
 0x36e   : > { %v578_v30 = vmax.f32 %v576_v24, %v577_v25 }
 0x370   : > { %v1797_v31 = vmax.f32 %v1794_v27, %v578_v30 }
 0x372   : > { %v584_v32 = vperm.slane %v1797_v31, 0  ;;  %688 = vst [vmem:[#allocation2] sm:$0x1] %v1797_v31 }
 0x374   : > { %v601_v33 = vsub.f32 %v554_v14, %v584_v32  ;;  %v600_v34 = vsub.f32 %v551_v53, %v584_v32  ;;  %v598_v35 = vsub.f32 %v545_v51, %v584_v32  ;;  %v599_v36 = vsub.f32 %v548_v5, %v584_v32 }
 0x375   : > { %v596_v42 = vsub.f32 %v539_v60, %v584_v32  ;;  %v597_v45 = vsub.f32 %v542_v2, %v584_v32  ;;  %v594_v49 = vsub.f32 %v533_v4, %v584_v32  ;;  %v595_v58 = vsub.f32 %v536_v6, %v584_v32 }
 0x376   : > { %v632_v37 = vmul.f32 1.442695, %v601_v33  ;;  %v630_v39 = vmul.f32 1.442695, %v600_v34  ;;  %v626_v41 = vmul.f32 1.442695, %v598_v35  ;;  %v592_v59 = vsub.f32 %v1781_v61, %v584_v32 }
 0x377   : > { %v628_v44 = vmul.f32 1.442695, %v599_v36  ;;  %v622_v47 = vmul.f32 1.442695, %v596_v42  ;;  %v624_v55 = vmul.f32 1.442695, %v597_v45  ;;  %v593_v52 = vsub.f32 %v1784_v3, %v584_v32 }
 0x378   : > { %1361 = vpow2.f32 %v632_v37  ;;  %v618_v1 = vmul.f32 1.442695, %v594_v49  ;;  %v586_v60 = vsub.f32 %v1739_v38, %v584_v32  ;;  %v620_v28 = vmul.f32 1.442695, %v595_v58  ;;  %v407_v34 = vld [vmem:[%s1669_s14 + $0x20] sm:$0xff] }
 0x379   : > { %1363 = vpow2.f32 %v630_v39  ;;  %v587_v63 = vsub.f32 %v1757_v0, %v584_v32  ;;  %v614_v61 = vmul.f32 1.442695, %v592_v59  ;;  %v590_v46 = vsub.f32 %v1769_v40, %v584_v32 }
 0x37a   : > { %1365 = vpow2.f32 %v626_v41  ;;  %v616_v51 = vmul.f32 1.442695, %v593_v52  ;;  %v588_v4 = vsub.f32 %v1764_v13, %v584_v32  ;;  %v591_v38 = vsub.f32 %v1776_v54, %v584_v32 }
 0x37b   : > { %1367 = vpow2.f32 %v628_v44  ;;  %v602_v5 = vmul.f32 1.442695, %v586_v60  ;;  %v589_v0 = vsub.f32 %v1766_v29, %v584_v32  ;;  %v604_v53 = vmul.f32 1.442695, %v587_v63 }
 0x37c   : > { %1369 = vpow2.f32 %v622_v47  ;;  %v610_v40 = vmul.f32 1.442695, %v590_v46  ;;  %v606_v48 = vmul.f32 1.442695, %v588_v4  ;;  %v612_v13 = vmul.f32 1.442695, %v591_v38 }
 0x37d   : > { %1371 = vpow2.f32 %v624_v55  ;;  %v608_v9 = vmul.f32 1.442695, %v589_v0  ;;  %v659_v37 = vpack.c.bf16 %v407_v34, %v407_v34  ;;  %v962_v45 = vperm.slane %v1779_v43, 0  ;;  %v960_v55 = vld [vmem:[#allocation4 + $0x8] sm:$0xff]  ;;  %v681_v38 = vld [vmem:[#allocation4] sm:$0xff] }
 0x37e   : > { %v1803_v62 = vpop.eup %1361  ;;  %1373 = vpow2.f32 %v618_v1  ;;  %v580_v47 = vsub.f32 %v1794_v27, %v1797_v31  ;;  %v634_v27 = vld [vmem:[#allocation3] sm:$0x1] }
 0x37f   : > { %v1806_v26 = vpop.eup %1363  ;;  %1375 = vpow2.f32 %v620_v28  ;;  %v964_v59 = vmul.f32 %v962_v45, %v960_v55 }
 0x380   : > { %v1809_v56 = vpop.eup %1365  ;;  %v667_v2 = vpack.c.bf16 %v1803_v62, %v1806_v26  ;;  %1377 = vpow2.f32 %v614_v61  ;;  %v581_v52 = vmul.f32 1.442695, %v580_v47 }
 0x381   : > { %v1814_v3 = vpop.eup %1367  ;;  %1379 = vpow2.f32 %v616_v51 }
 0x382   : > { %668 = vmatpush.bf16.msrb.mxu1 %v667_v2  ;;  %v1370_v6 = vpop.eup %1369  ;;  %v666_v7 = vpack.c.bf16 %v1814_v3, %v1809_v56  ;;  %1381 = vpow2.f32 %v602_v5 }
 0x383   : > { %v1372_v8 = vpop.eup %1371  ;;  %1383 = vpow2.f32 %v604_v53 }
 0x384   : > { %v1374_v54 = vpop.eup %1373  ;;  %v665_v57 = vpack.c.bf16 %v1372_v8, %v1370_v6  ;;  %1385 = vpow2.f32 %v610_v40 }
 0x385   : > { %v1376_v10 = vpop.eup %1375  ;;  %1387 = vpow2.f32 %v606_v48 }
 0x386   : > { %669 = vmatpush.bf16.msrb.mxu1 %v666_v7  ;;  %v1378_v29 = vpop.eup %1377  ;;  %1389 = vpow2.f32 %v612_v13  ;;  %v664_v12 = vpack.c.bf16 %v1376_v10, %v1374_v54 }
 0x387   : > { %v1380_v11 = vpop.eup %1379  ;;  %1391 = vpow2.f32 %v608_v9 }
 0x388   : > { %v1382_v50 = vpop.eup %1381  ;;  %v663_v19 = vpack.c.bf16 %v1380_v11, %v1378_v29  ;;  %1393 = vpow2.f32 %v581_v52 }
 0x389   : > { %v1384_v14 = vpop.eup %1383 }
 0x38a   : > { %670 = vmatpush.bf16.msrb.mxu1 %v665_v57  ;;  %v1386_v15 = vpop.eup %1385  ;;  %v636_v16 = vadd.f32 %v1384_v14, %v1382_v50  ;;  %v660_v36 = vpack.c.bf16 %v1384_v14, %v1382_v50 }
 0x38b   : > { %v1388_v17 = vpop.eup %1387 }
 0x38c   : > { %v1390_v18 = vpop.eup %1389  ;;  %v637_v20 = vadd.f32 %v1388_v17, %v636_v16 }
 0x38d   : > { %v1392_v21 = vpop.eup %1391  ;;  %v662_v23 = vpack.c.bf16 %v1390_v18, %v1386_v15 }
 0x38e   : > { %671 = vmatpush.bf16.msrb.mxu1 %v664_v12  ;;  %v638_v22 = vadd.f32 %v1392_v21, %v637_v20  ;;  %v661_v30 = vpack.c.bf16 %v1392_v21, %v1388_v17  ;;  %v1394_v46 = vpop.eup %1393 }
 0x38f   : > { %v635_v51 = vmul.f32 %v1394_v46, %v634_v27 }
 0x390   : > { %v639_v24 = vadd.f32 %v1386_v15, %v638_v22 }
 0x392   : > { %672 = vmatpush.bf16.msrb.mxu1 %v663_v19  ;;  %v640_v25 = vadd.f32 %v1390_v18, %v639_v24 }
 0x394   : > { %v641_v32 = vadd.f32 %v1378_v29, %v640_v25 }
 0x396   : > { %673 = vmatpush.bf16.msrb.mxu1 %v662_v23  ;;  %v642_v33 = vadd.f32 %v1380_v11, %v641_v32 }
 0x398   : > { %v643_v35 = vadd.f32 %v1374_v54, %v642_v33 }
 0x39a   : > { %674 = vmatpush.bf16.msrb.mxu1 %v661_v30  ;;  %v644_v39 = vadd.f32 %v1376_v10, %v643_v35 }
 0x39c   : > { %v645_v41 = vadd.f32 %v1370_v6, %v644_v39 }
 0x39e   : > { %675 = vmatpush.bf16.msrb.mxu1 %v660_v36  ;;  %v646_v42 = vadd.f32 %v1372_v8, %v645_v41 }
 0x3a0   : > { %v647_v44 = vadd.f32 %v1809_v56, %v646_v42 }
 0x3a1   : > { %676 = vmatmul.bf16.vlgmr.msrb.gmra.mxu1 %v659_v37 }
 0x3a2   : > { %v648_v49 = vadd.f32 %v1814_v3, %v647_v44 }
 0x3a4   : > { %v649_v58 = vadd.f32 %v1806_v26, %v648_v49  ;;  %v683_v26 = vperm.slane %v1394_v46, 0 }
 0x3a6   : > { %v650_v1 = vadd.f32 %v1803_v62, %v649_v58  ;;  %v685_v5 = vmul.f32 %v683_v26, %v681_v38 }
 0x3a8   : > { %v651_v63 = vrot.slane %v650_v1, 4 }
 0x3aa   : > { %v956_v60 = vpop.f32.mrf.mxu3  ;;  %v652_v56 = vadd.f32 %v651_v63, %v650_v1 }
 0x3ab   : > { %v965_v28 = vadd.f32 %v964_v59, %v956_v60 }
 0x3ac   : > { %v653_v2 = vrot.slane %v652_v56, 2 }
 0x3ad   : > { %966 = vst [vmem:[#allocation4 + $0x8] sm:$0xff] %v965_v28 }
 0x3ae   : > { %v654_v43 = vadd.f32 %v653_v2, %v652_v56 }
 0x3b0   : > { %v655_v31 = vrot.slane %v654_v43, 1 }
 0x3b2   : > { %v958_v61 = vpop.f32.mrf.mxu3  ;;  %v656_v3 = vadd.f32 %v655_v31, %v654_v43 }
 0x3b4   : > { %v657_v4 = vadd.f32 %v656_v3, %v635_v51 }
 0x3b6   : > { %658 = vst [vmem:[#allocation3] sm:$0x1] %v657_v4 }
 0x41e   : > { %v677_v62 = vpop.f32.mrf.mxu1 }
 0x41f   : > { %v686_v0 = vadd.f32 %v685_v5, %v677_v62 }
 0x421   : > { %687 = vst [vmem:[#allocation4] sm:$0xff] %v686_v0 }
 0x422   : > { %971 = sbr.rel (%p1223_p4) target bundleno = 1217 (0x4c1), region = 52 }
 0x426   : > { %v679_v53 = vpop.f32.mrf.mxu1 }
 0x427   : > { %v973_v6 = vld [vmem:[#allocation3 + $0x1] sm:$0x1]  ;;  %v972_v7 = vld [vmem:[#allocation3] sm:$0x1]  ;;  %v1514_v8 = vmov 0   ;;  %v1003_v22 = vld [vmem:[#allocation4 + $0x8] sm:$0xff] }
 0x428   : > { %1396 = vrcp.f32 %v973_v6  ;;  %v1013_v40 = vld [vmem:[%s1895_s4] sm:$0xf]  ;;  %1395 = vset.pattern.permute.xlu0 %v1514_v8  ;;  %vm993_vm5 = vweird.f32 %v973_v6  ;;  %v999_v54 = vand.u32 2147483648, %v973_v6  ;;  %v997_v29 = vand.u32 2147483647, %v973_v6  ;;  %v1002_v30 = vld [vmem:[#allocation4] sm:$0xff] }
 0x429   : > { %1398 = vrcp.f32 %v972_v7  ;;  %1016 = vperm.xlu0 %1395, %v1013_v40   ;;  %v985_v11 = vand.u32 2147483648, %v972_v7  ;;  %vm979_vm7 = vweird.f32 %v972_v7  ;;  %v983_v12 = vand.u32 2147483647, %v972_v7  ;;  %v1012_v35 = vld [vmem:[%s1894_s3] sm:$0xf] }
 0x42a   : > { %v1000_v15 = vor.u32 1.1754944e-38, %v999_v54  ;;  %vm998_vm10 = vcmp.eq.f32.partialorder %v997_v29, 8.507059e+37  ;;  %vm1019_vm13 = vcmask 130048  }
 0x42b   : > { %v986_v18 = vor.u32 1.1754944e-38, %v985_v11  ;;  %vm984_vm12 = vcmp.eq.f32.partialorder %v983_v12, 8.507059e+37 }
 0x42e   : > { %v1397_v48 = vpop.eup %1396 }
 0x42f   : > { %v1399_v13 = vpop.eup %1398  ;;  %v989_v9 = vmul.f32 %v1397_v48, %v973_v6  ;;  %vm994_vm6 = vweird.f32 %v1397_v48 }
 0x430   : > { %v975_v57 = vmul.f32 %v1399_v13, %v972_v7  ;;  %vm980_vm8 = vweird.f32 %v1399_v13  ;;  %vm995_vm9 = vmor %vm993_vm5, %vm994_vm6 }
 0x431   : > { %v990_v10 = vsub.f32 1.0, %v989_v9  ;;  %vm981_vm11 = vmor %vm979_vm7, %vm980_vm8 }
 0x432   : > { %v976_v50 = vsub.f32 1.0, %v975_v57 }
 0x433   : > { %v991_v14 = vmul.f32 %v1397_v48, %v990_v10 }
 0x434   : > { %v977_v16 = vmul.f32 %v1399_v13, %v976_v50 }
 0x435   : > { %v992_v17 = vadd.f32 %v1397_v48, %v991_v14 }
 0x436   : > { %v978_v19 = vadd.f32 %v1399_v13, %v977_v16 }
 0x437   : > { %v996_v20 = vsel %vm995_vm9, %v1397_v48, %v992_v17 }
 0x438   : > { %v1001_v21 = vsel %vm998_vm10, %v1000_v15, %v996_v20  ;;  %v982_v23 = vsel %vm981_vm11, %v1399_v13, %v978_v19 }
 0x439   : > { %v1007_v24 = vperm.slane %v1001_v21, 0  ;;  %v987_v25 = vsel %vm984_vm12, %v986_v18, %v982_v23 }
 0x43a   : > { %v1006_v32 = vperm.slane %v987_v25, 0 }
 0x43b   : > { %v1011_v33 = vmul.f32 %v1007_v24, %v1003_v22 }
 0x43c   : > { %v1010_v34 = vmul.f32 %v1006_v32, %v1002_v30 }
 0x43d   : > { %1037 = vmatpush.msra.mxu0 %v1011_v33 }
 0x43f   : > { %1038 = vmatpush.msra.mxu0 %v1010_v34 }
 0x440   : > { %1224 = vmatmul.msk.f32.vlgmr.msra.gmra.mxu0 %vm1019_vm13, %v1012_v35 }
 0x49b   : > { %v1017_v36 = vpop.permute.xlu0 %1016 }
 0x4bd   : > { %v1040_v37 = vpop.f32.mrf.mxu0 }
 0x4be   : > { %v1041_v39 = vadd.f32 %v1040_v37, %v1017_v36 }
 0x4c0   : > { %1043 = vst [vmem:[%s269_s9] sm:$0xf] %v1041_v39 }
 0x4c1 PF: > { %s1226_s10 = sshll.u32 %s1494_s23, 1  ;;  %s1059_s7 = sshll.u32 %s269_s9, 4  ;;  %s1060_s7 = int_to_ptr.vmem [resolvable:$true] %s1059_s7 }
 0x4c2   : > { %s1055_s11 = sadd.s32 %s1490_s22, %s1226_s10  ;;  %s1916_s25 = sand.u32 1, %s1478_s19  }
 0x4c3   : > { %s1227_s13 = sshll.u32 %s1055_s11, 2  ;;  %s1045_s26 = scalar_lea.sflag [#allocation8], %s1916_s25 }
 0x4c4   : > { %s1057_s20 = scalar_lea.hbm %s1896_s5, %s1227_s13  ;;  %s1420_s9 = scalar_lea.hbm %s1896_s5, 16 }
 0x4c5   : > { %s1061_s24 = sshll.u32 %s1057_s20, 4  ;;  %s1062_s24 = int_to_ptr.hbm [resolvable:$true] %s1061_s24 }
 0x4c6   : > { %s1414_s30 = sshra.s32 %s1062_s24, 4  ;;  %s1415_s30 = int_to_ptr.hbm [resolvable:$true] %s1414_s30 }
 0x4c7   : > { %s1416_s6 = scalar_lea.hbm %s1415_s30, 4  ;;  %p1421_p10 = scmp.lt.s32.totalorder %s1415_s30, %s1896_s5 }
 0x4c8   : > { %p1417_p5 = scmp.ne.s32.totalorder %s1415_s30, %s1416_s6  ;;  %p1422_p11 = scmp.lt.s32.totalorder %s1420_s9, %s1416_s6 }
 0x4ca   : > { %p1418_p8 = pnand %p1417_p5, %p1607_p6  ;;  %p1423_p12 = por %p1422_p11, %p1421_p10 }
 0x4cc   : > { %p1419_p9 = pneg %p1418_p8 }
 0x4ce   : > { %p1424_p13 = pnand %p1423_p12, %p1419_p9 }
 0x4d0   : > { %1427 = shalt.err (!%p1424_p13)
}
 0x4d1   : > { %1236 = dma.vmem_to_hbm [thread:$0]  (%p1607_p6), %s1060_s7, 64, %s1062_s24, %s1045_s26  }
 0x4d2 PF: > { %p1242_p0 = scmp.ge.s32.totalorder %s1510_s27, 2  ;;  %s1073_s28 = sand.u32 1, %s1474_s18  }
 0x4d3   : > { %s1074_s21 = scalar_lea.sflag [#allocation8], %s1073_s28 }
 0x4d4   : > { %p1239_p1 = pnand %p1242_p0, %p1614_p7 }
 0x4d6   : > { %p1240_p2 = pneg %p1239_p1 }
 0x4d8   : > { %1469 = dma.done.wait (%p1240_p2), %s1074_s21, 64  }
 0x4d9   : > { %1471 = vsyncadd (%p1240_p2), %s1074_s21, 4294967232  ;;  %s18_s27 = sadd.s32 1, %s1510_s27   ;;  %s1918_s29 = sld [smem:[#allocation10_spill]] }
 0x4da   : > { %p15_p3 = scmp.ge.s32.totalorder %s18_s27, 10   ;;  %s1919_s20 = sld [smem:[#allocation18_spill]] }
 0x4db   : > { %s1920_s21 = sld [smem:[#allocation11_spill]]  ;;  %s1926_s18 = smov %s1478_s19 }
 0x4dc   : > { %s1921_s22 = sld [smem:[#allocation12_spill]]  ;;  %17 = sbr.rel (!%p15_p3) target bundleno = 6 (0x6), region = 94 }
 0x4dd   : > { %s1922_s23 = sld [smem:[#allocation13_spill]] }
 0x4de   : > { %s1923_s24 = sld [smem:[#allocation14_spill]] }
 0x4df   : > { %s1924_s25 = sld [smem:[#allocation15_spill]]  ;;  %s1927_s19 = smov %s1918_s29 }
 0x4e0   : > { %s1925_s26 = sld [smem:[#allocation17_spill]] }
 0x4e1   :  { %1080 = vsyncpa [#allocation8], 1 }
 0x4e2   :  { %1082 = vsyncpa [#allocation8 + $0x1], 1 }

</bundles_post_ra>
